<compile_context>
chip_gen: v5e
topology: v5e:2x2
jax: 0.10.0
libtpu: 0.0.40
codegen_flags: <defaults>
</compile_context>

<pallas_src>
import functools

import numpy as np
import jax
import jax.numpy as jnp
from jax import lax
from jax.experimental import pallas as pl
from jax.experimental.pallas import tpu as pltpu


def _round_up(x, m):
    return (x + m - 1) // m * m


# ----------------------------- Pallas kernel (hot path) -----------------------------
def _portrait_kernel(n_cate, offsets, oh_rows,
                     head_ref, ids_ref, wbig_ref, wb_ref, bb_ref, o_ref):
    """Lane-dense (feature-major) compute; the batch tile lives on the lane axis.

    head_ref : [head_rows, TB] f32   rows = [dense features | 1.0 (bias row) | 0 pad]
    ids_ref  : [n_cate,    TB] i32   raw per-feature category ids
    wbig_ref : [H0, K_pad]     f32   fused layer-1 weights: [Wa_dense | ba | 0 | emb*Wa | 0]
    wb_ref   : [H1, H0]        f32
    bb_ref   : [H1, 1]         f32
    o_ref    : [TB, H1]        f32   batch-major output tile
    """
    head = head_ref[...]                                  # [head_rows, TB]
    ids = ids_ref[...]                                     # [n_cate,  TB]
    tb = ids.shape[1]

    # Multi-hot over the concatenated vocabulary, built lane-dense ([oh_rows, TB]).
    # Per-feature id ranges are disjoint -> boolean OR, cast to f32 exactly once.
    # offsets are static Python ints, so no offset-add array op is emitted for feature 0.
    iota_v = lax.broadcasted_iota(jnp.int32, (oh_rows, tb), 0)

    def _mask(i):
        row = ids[i:i + 1, :]
        if offsets[i]:
            row = row + offsets[i]
        return row == iota_v

    hot = _mask(0)
    for i in range(1, n_cate):
        hot = jnp.logical_or(hot, _mask(i))
    hot = hot.astype(jnp.float32)                          # [oh_rows, TB]

    # Layer 1 as a single matmul: Xbig rows = [dense | 1 | 0 pad | multi-hot].
    # The splice boundary is sublane-aligned (head_rows is a multiple of 8).
    xbig = jnp.concatenate([head, hot], axis=0)            # [K_pad, TB]
    h = jnp.maximum(
        jnp.dot(wbig_ref[...], xbig, preferred_element_type=jnp.float32), 0.0)   # [H0, TB]

    # Layer 2 (BatchNorm branch of the reference forward is dead code).
    o = jnp.dot(wb_ref[...], h, preferred_element_type=jnp.float32) + bb_ref[...]
    o_ref[...] = jnp.maximum(o, 0.0).T                     # [TB, H1] batch-major store


def _portrait_mlp(head, ids_t, wbig_t, wb_t, bb_col, *, n_cate, offsets, tile_b):
    head_rows, bs_pad = head.shape
    h0, k_pad = wbig_t.shape
    h1 = wb_t.shape[0]
    oh_rows = k_pad - head_rows
    assert bs_pad % tile_b == 0
    n_tiles = bs_pad // tile_b

    kernel = functools.partial(_portrait_kernel, n_cate, offsets, oh_rows)
    return pl.pallas_call(
        kernel,
        out_shape=jax.ShapeDtypeStruct((bs_pad, h1), jnp.float32),
        grid=(n_tiles,),
        in_specs=[
            pl.BlockSpec((head_rows, tile_b), lambda i: (0, i)),   # batch-tiled activations
            pl.BlockSpec((n_cate, tile_b), lambda i: (0, i)),
            pl.BlockSpec((h0, k_pad), lambda i: (0, 0)),           # weights: VMEM-resident
            pl.BlockSpec((h1, h0), lambda i: (0, 0)),
            pl.BlockSpec((h1, 1), lambda i: (0, 0)),
        ],
        out_specs=pl.BlockSpec((tile_b, h1), lambda i: (i, 0)),
        compiler_params=pltpu.CompilerParams(
            dimension_semantics=("parallel",),
        ),
    )(head, ids_t, wbig_t, wb_t, bb_col)


# ----------------------------- One-time weight fusion -----------------------------
def prepare_params(params, nume_fea_size):
    """Fold the dim-1 embeddings, Wa and ba into one layer-1 matrix.  Call once per
    weight update, NOT per forward call."""
    emb_tables = params["emb_tables"]
    n_cate = len(emb_tables)
    n_dense = nume_fea_size
    h0 = params["wa"].shape[1]

    voc_sizes = [int(t.shape[0]) for t in emb_tables]
    v_total = sum(voc_sizes)
    offsets = tuple(int(x) for x in np.concatenate([[0], np.cumsum(voc_sizes)[:-1]]))

    head_rows = _round_up(n_dense + 1, 8)            # [dense | bias | 0 pad], sublane-aligned
    k_pad = _round_up(head_rows + v_total, 8)        # contraction dim: sublane multiple only

    # Contribution of vocab row v (feature f, local id c): table_f[c] * Wa[n_dense + f, :]
    table_concat = jnp.concatenate([t[:, 0] for t in emb_tables])              # [v_total]
    feat_of_voc = np.repeat(np.arange(n_cate), voc_sizes)                       # [v_total]
    w_emb = table_concat[:, None] * params["wa"][n_dense:, :][feat_of_voc]      # [v_total, H0]

    wbig = jnp.concatenate([
        params["wa"][:n_dense, :],                                  # dense columns
        params["ba"].reshape(1, h0),                                # bias column (x 1.0 row)
        jnp.zeros((head_rows - n_dense - 1, h0), jnp.float32),      # alignment pad
        w_emb,                                                      # fused embedding x Wa
        jnp.zeros((k_pad - head_rows - v_total, h0), jnp.float32),  # tail pad
    ], axis=0)                                                       # [K_pad, H0]

    return {
        "wbig_t": wbig.T,                                 # [H0, K_pad]
        "wb_t": params["wb"].T,                           # [H1, H0]
        "bb_col": params["bb"].reshape(-1, 1),            # [H1, 1]
        "meta": {
            "n_cate": n_cate, "n_dense": n_dense, "offsets": offsets,
            "head_rows": head_rows, "k_pad": k_pad, "v_total": v_total,
        },
    }


# ----------------------------- Parameter init (deterministic) -----------------------------
def init_params(key, cate_fea_nuniqs, nume_fea_size, n_hidden):
    n_cate = len(cate_fea_nuniqs)
    F = n_cate + nume_fea_size
    H0, H1 = n_hidden
    keys = jax.random.split(key, n_cate + 4)
    emb_tables = [
        jax.random.normal(keys[i], (voc, 1), dtype=jnp.float32)
        for i, voc in enumerate(cate_fea_nuniqs)
    ]
    wa = jax.random.uniform(keys[n_cate + 0], (F, H0), jnp.float32, -1.0, 1.0) / jnp.sqrt(F)
    ba = jax.random.uniform(keys[n_cate + 1], (1, H0), jnp.float32, -1.0, 1.0) / jnp.sqrt(F)
    wb = jax.random.uniform(keys[n_cate + 2], (H0, H1), jnp.float32, -1.0, 1.0) / jnp.sqrt(H0)
    bb = jax.random.uniform(keys[n_cate + 3], (1, H1), jnp.float32, -1.0, 1.0) / jnp.sqrt(H0)
    return {"emb_tables": emb_tables, "wa": wa, "ba": ba, "wb": wb, "bb": bb}


# ----------------------------- Forward (thin wrapper + kernel) -----------------------------
def _pick_tile(bs, tile_b):
    bs128 = _round_up(bs, 128)
    tb = _round_up(max(128, min(int(tile_b), bs128)), 128)
    # Keep >= 2 grid tiles whenever the batch allows it so the "parallel" axis can shard
    # across both TensorCores on v7x (harmless on v5e/v6e: the grid is a serial loop).
    if tb >= bs128 and bs128 >= 256:
        tb = _round_up(bs128 // 2, 128)
    bs_pad = _round_up(bs, tb)
    return tb, bs_pad


def portrait_embedding_forward(prepared, X_sparse, X_dense, *, tile_b=2048):
    meta = prepared["meta"]
    n_dense, n_cate, head_rows = meta["n_dense"], meta["n_cate"], meta["head_rows"]
    bs = X_sparse.shape[0]
    tb, bs_pad = _pick_tile(bs, tile_b)

    # Feature-major ("batch on the lane axis") activations with the constant-1 bias row baked
    # in.  These are tiny [<=8, bs] relayouts; they stay host-side (and fuse under the
    # caller's jit) because the reverse [TB, 4] -> [4, TB] transpose is the lane-unaligned
    # direction inside a kernel.
    pieces = []
    if n_dense:
        pieces.append(X_dense.astype(jnp.float32).T)                 # [n_dense, bs]
    pieces.append(jnp.ones((1, bs), jnp.float32))                    # bias row
    if head_rows - n_dense - 1:
        pieces.append(jnp.zeros((head_rows - n_dense - 1, bs), jnp.float32))
    head = jnp.concatenate(pieces, axis=0)                           # [head_rows, bs]
    ids_t = X_sparse.astype(jnp.int32).T                             # [n_cate, bs]

    if bs_pad != bs:
        # Padded columns carry id 0 (a valid vocab row) and dense 0 -> finite garbage that is
        # sliced off below; no NaN/Inf risk.
        head = jnp.pad(head, ((0, 0), (0, bs_pad - bs)))
        ids_t = jnp.pad(ids_t, ((0, 0), (0, bs_pad - bs)))

    out = _portrait_mlp(head, ids_t, prepared["wbig_t"], prepared["wb_t"], prepared["bb_col"],
                        n_cate=n_cate, offsets=meta["offsets"], tile_b=tb)
    return out if bs_pad == bs else out[:bs]                         # [bs, H1] batch-major


# ----------------------------- Pure-JAX reference (matches the PyTorch forward) -----------------------------
def portrait_embedding_ref(params, X_sparse, X_dense):
    cols = [tbl[X_sparse[:, i], 0] for i, tbl in enumerate(params["emb_tables"])]
    x = jnp.concatenate([X_dense.astype(jnp.float32), jnp.stack(cols, axis=1)], axis=1)
    hi = jax.lax.Precision.HIGHEST
    h = jax.nn.relu(jnp.dot(x, params["wa"], precision=hi) + params["ba"])
    return jax.nn.relu(jnp.dot(h, params["wb"], precision=hi) + params["bb"])


if __name__ == "__main__":
    cate_fea_nuniqs = [11, 7, 13, 5]   # 4 categorical features, vocab total = 36
    nume_fea_size = 4
    n_hidden = [32, 16]
    bs = 512

    key = jax.random.PRNGKey(0)
    k_par, k_sp, k_de = jax.random.split(key, 3)
    params = init_params(k_par, cate_fea_nuniqs, nume_fea_size, n_hidden)
    prepared = prepare_params(params, nume_fea_size)    # one-time weight/embedding fusion

    keys_sp = jax.random.split(k_sp, len(cate_fea_nuniqs))
    X_sparse = jnp.stack(
        [jax.random.randint(keys_sp[i], (bs,), 0, v, dtype=jnp.int32)
         for i, v in enumerate(cate_fea_nuniqs)],
        axis=1,
    )                                                                      # [bs, 4] int32
    X_dense = jax.random.normal(k_de, (bs, nume_fea_size), dtype=jnp.float32)  # [bs, 4] f32

    # jit the wrapper so the tiny input relayouts fuse into the same executable as the kernel.
    forward = jax.jit(functools.partial(portrait_embedding_forward, prepared))
    out = jax.block_until_ready(forward(X_sparse, X_dense))               # default tile picker
                                                                           # -> 2 tiles of 256

    ref = portrait_embedding_ref(params, X_sparse, X_dense)
    assert out.shape == (bs, n_hidden[1])
    assert jnp.allclose(out, ref, atol=1e-4, rtol=1e-4), "mismatch vs pure-JAX reference"

    print("KERNEL_OK")
</pallas_src>

<mosaic_0001>
module attributes {stable_mosaic.version = 11 : i64} {
  func.func @_portrait_kernel(%arg0: i32, %arg1: memref<8x256xf32, #tpu.memory_space<vmem>>, %arg2: memref<4x256xi32, #tpu.memory_space<vmem>>, %arg3: memref<32x48xf32, #tpu.memory_space<vmem>>, %arg4: memref<16x32xf32, #tpu.memory_space<vmem>>, %arg5: memref<16x1xf32, #tpu.memory_space<vmem>>, %arg6: memref<256x16xf32, #tpu.memory_space<vmem>>) attributes {dimension_semantics = [#tpu.dimension_semantics<parallel>], iteration_bounds = array<i64: 2>, scalar_prefetch = 0 : i64, scratch_operands = 0 : i64, tpu.core_type = #tpu.core_type<tc>, window_params = [{transform_indices = @transform_0, window_bounds = array<i64: 8, 256>}, {transform_indices = @transform_1, window_bounds = array<i64: 4, 256>}, {pipeline_mode = #tpu.pipeline_mode<synchronous>, transform_indices = @transform_2, window_bounds = array<i64: 32, 48>}, {pipeline_mode = #tpu.pipeline_mode<synchronous>, transform_indices = @transform_3, window_bounds = array<i64: 16, 32>}, {pipeline_mode = #tpu.pipeline_mode<synchronous>, transform_indices = @transform_4, window_bounds = array<i64: 16, 1>}, {transform_indices = @transform_5, window_bounds = array<i64: 256, 16>}]} {
    %c0 = arith.constant 0 : index
    %c0_0 = arith.constant 0 : index
    %0 = vector.load %arg1[%c0, %c0_0] : memref<8x256xf32, #tpu.memory_space<vmem>>, vector<8x256xf32>
    %c0_1 = arith.constant 0 : index
    %c0_2 = arith.constant 0 : index
    %1 = vector.load %arg2[%c0_1, %c0_2] : memref<4x256xi32, #tpu.memory_space<vmem>>, vector<4x256xi32>
    %2 = tpu.iota {dimensions = array<i32: 0>} : vector<40x256xi32>
    %3 = vector.extract_strided_slice %1 {offsets = [0, 0], sizes = [1, 256], strides = [1, 1]} : vector<4x256xi32> to vector<1x256xi32>
    %4 = vector.broadcast %3 : vector<1x256xi32> to vector<40x256xi32>
    %5 = arith.cmpi eq, %4, %2 : vector<40x256xi32>
    %6 = vector.extract_strided_slice %1 {offsets = [1, 0], sizes = [1, 256], strides = [1, 1]} : vector<4x256xi32> to vector<1x256xi32>
    %c11_i32 = arith.constant 11 : i32
    %7 = vector.broadcast %c11_i32 : i32 to vector<1x256xi32>
    %8 = arith.addi %6, %7 : vector<1x256xi32>
    %9 = vector.broadcast %8 : vector<1x256xi32> to vector<40x256xi32>
    %10 = arith.cmpi eq, %9, %2 : vector<40x256xi32>
    %11 = arith.ori %5, %10 : vector<40x256xi1>
    %12 = vector.extract_strided_slice %1 {offsets = [2, 0], sizes = [1, 256], strides = [1, 1]} : vector<4x256xi32> to vector<1x256xi32>
    %c18_i32 = arith.constant 18 : i32
    %13 = vector.broadcast %c18_i32 : i32 to vector<1x256xi32>
    %14 = arith.addi %12, %13 : vector<1x256xi32>
    %15 = vector.broadcast %14 : vector<1x256xi32> to vector<40x256xi32>
    %16 = arith.cmpi eq, %15, %2 : vector<40x256xi32>
    %17 = arith.ori %11, %16 : vector<40x256xi1>
    %18 = vector.extract_strided_slice %1 {offsets = [3, 0], sizes = [1, 256], strides = [1, 1]} : vector<4x256xi32> to vector<1x256xi32>
    %c31_i32 = arith.constant 31 : i32
    %19 = vector.broadcast %c31_i32 : i32 to vector<1x256xi32>
    %20 = arith.addi %18, %19 : vector<1x256xi32>
    %21 = vector.broadcast %20 : vector<1x256xi32> to vector<40x256xi32>
    %22 = arith.cmpi eq, %21, %2 : vector<40x256xi32>
    %23 = arith.ori %17, %22 : vector<40x256xi1>
    %24 = arith.extui %23 : vector<40x256xi1> to vector<40x256xi32>
    %25 = arith.sitofp %24 : vector<40x256xi32> to vector<40x256xf32>
    %26 = tpu.concatenate %0, %25 in 0 : vector<8x256xf32>, vector<40x256xf32> -> vector<48x256xf32>
    %c0_3 = arith.constant 0 : index
    %c0_4 = arith.constant 0 : index
    %27 = vector.load %arg3[%c0_3, %c0_4] : memref<32x48xf32, #tpu.memory_space<vmem>>, vector<32x48xf32>
    %cst = arith.constant dense<0.000000e+00> : vector<32x256xf32>
    %28 = tpu.matmul %27, %26, %cst {dimension_numbers = #tpu.dot_dimension_numbers<[1], [0], [0], [1], [0, 0, 1, 1], [], []>} : vector<32x48xf32>, vector<48x256xf32>, vector<32x256xf32> -> vector<32x256xf32>
    %cst_5 = arith.constant 0.000000e+00 : f32
    %29 = vector.broadcast %cst_5 : f32 to vector<32x256xf32>
    %30 = arith.maximumf %28, %29 : vector<32x256xf32>
    %c0_6 = arith.constant 0 : index
    %c0_7 = arith.constant 0 : index
    %31 = vector.load %arg4[%c0_6, %c0_7] : memref<16x32xf32, #tpu.memory_space<vmem>>, vector<16x32xf32>
    %cst_8 = arith.constant dense<0.000000e+00> : vector<16x256xf32>
    %32 = tpu.matmul %31, %30, %cst_8 {dimension_numbers = #tpu.dot_dimension_numbers<[1], [0], [0], [1], [0, 0, 1, 1], [], []>} : vector<16x32xf32>, vector<32x256xf32>, vector<16x256xf32> -> vector<16x256xf32>
    %c0_9 = arith.constant 0 : index
    %c0_10 = arith.constant 0 : index
    %33 = vector.load %arg5[%c0_9, %c0_10] : memref<16x1xf32, #tpu.memory_space<vmem>>, vector<16x1xf32>
    %34 = vector.broadcast %33 : vector<16x1xf32> to vector<16x256xf32>
    %35 = arith.addf %32, %34 : vector<16x256xf32>
    %cst_11 = arith.constant 0.000000e+00 : f32
    %36 = vector.broadcast %cst_11 : f32 to vector<16x256xf32>
    %37 = arith.maximumf %35, %36 : vector<16x256xf32>
    %38 = tpu.transpose %37, [1, 0] : vector<16x256xf32> -> vector<256x16xf32>
    %c0_12 = arith.constant 0 : index
    %c0_13 = arith.constant 0 : index
    %39 = vector.load %arg6[%c0_12, %c0_13] : memref<256x16xf32, #tpu.memory_space<vmem>>, vector<256x16xf32>
    tpu.vector_store %arg6[%c0_12, %c0_13], %38 {strides = array<i32>} : memref<256x16xf32, #tpu.memory_space<vmem>>, vector<256x16xf32>,
    return
  }
  func.func @transform_0(%arg0: i32) -> (i32, i32) {
    %c0_i32 = arith.constant 0 : i32
    %c0_i32_0 = arith.constant 0 : i32
    return %c0_i32, %arg0 : i32, i32
  }
  func.func @transform_1(%arg0: i32) -> (i32, i32) {
    %c0_i32 = arith.constant 0 : i32
    %c0_i32_0 = arith.constant 0 : i32
    return %c0_i32, %arg0 : i32, i32
  }
  func.func @transform_2(%arg0: i32) -> (i32, i32) {
    %c0_i32 = arith.constant 0 : i32
    %c0_i32_0 = arith.constant 0 : i32
    %c0_i32_1 = arith.constant 0 : i32
    return %c0_i32, %c0_i32_0 : i32, i32
  }
  func.func @transform_3(%arg0: i32) -> (i32, i32) {
    %c0_i32 = arith.constant 0 : i32
    %c0_i32_0 = arith.constant 0 : i32
    %c0_i32_1 = arith.constant 0 : i32
    return %c0_i32, %c0_i32_0 : i32, i32
  }
  func.func @transform_4(%arg0: i32) -> (i32, i32) {
    %c0_i32 = arith.constant 0 : i32
    %c0_i32_0 = arith.constant 0 : i32
    %c0_i32_1 = arith.constant 0 : i32
    return %c0_i32, %c0_i32_0 : i32, i32
  }
  func.func @transform_5(%arg0: i32) -> (i32, i32) {
    %c0_i32 = arith.constant 0 : i32
    %c0_i32_0 = arith.constant 0 : i32
    return %arg0, %c0_i32 : i32, i32
  }
}

</mosaic_0001>

<bundles_post_ra>
// kernel: portrait_embedding_forward.1
= control target key start
LH: loop header
LB: loop body
LE: loop exit
PB: predicated region body
PF: predicated region fallthrough
CT: control target
= control target key end

     0   :  { %10 = vsyncpa [#allocation3], 0  ;;  %s877_s18 = smov 0   ;;  %s1091_s0 = inlined_call_operand.vmem [shape: f32[8,512], index: 0, kind: input, shape index: {}]   ;;  %s1092_s1 = inlined_call_operand.vmem [shape: s32[4,512], index: 1, kind: input, shape index: {}]   ;;  %s1093_s2 = inlined_call_operand.vmem [shape: f32[32,48], index: 2, kind: input, shape index: {}]   ;;  %s1094_s3 = inlined_call_operand.hbm [shape: f32[16,32], index: 3, kind: input, shape index: {}]   ;;  %s1095_s4 = inlined_call_operand.vmem [shape: f32[16,1], index: 4, kind: input, shape index: {}]   ;;  %s1096_s5 = inlined_call_operand.vmem [shape: f32[512,16], index: 5, kind: output, shape index: {}]  }
   0x1 LB: > { %s176_s21 = sshll.u32 %s1094_s3, 4  ;;  %s886_s22 = sadd.s32 4294967295, %s840_s18   ;;  %s840_s18 = sphi %s877_s18, %s16_s18   ;;  %s177_s21 = int_to_ptr.hbm [resolvable:$true] %s176_s21 }
   0x2   : > { %p718_p0 = scmp.ge.s32.totalorder %s840_s18, 1  ;;  %p162_p1 = scmp.lt.s32.totalorder %s840_s18, 3 }
   0x3   : > { %p783_p2 = scmp.eq.s32.totalorder %s886_s22, 0  ;;  %s842_s23 = smov [#allocation2]  }
   0x4   : > { %p163_p3 = pnand %p718_p0, %p162_p1  ;;  %s178_s24 = sshll.u32 %s842_s23, 4  ;;  %s179_s24 = int_to_ptr.vmem [resolvable:$true] %s178_s24 }
   0x5   : > { %s843_s25 = smov 128   ;;  %s844_s26 = smov 8  }
   0x6   : > { %p779_p4 = pneg %p163_p3  ;;  %215 = sbr.rel (%p163_p3) target bundleno = 627 (0x273), region = 40 }
   0x8   : > { %p780_p5 = pnand %p783_p2, %p779_p4 }
   0xa   : > { %782 = dma.hbm_to_vmem [thread:$0]  (!%p780_p5), %s177_s21, 256, %s179_s24, [#allocation3], %s843_s25, %s843_s25, %s844_s26  }
   0xb   : > { %835 = dma.done.wait (%p783_p2), [#allocation3], 256  }
   0xc   : > { %837 = vsyncadd (%p783_p2), [#allocation3], 4294967040  ;;  %s723_s27 = sshll.u32 %s886_s22, 1  ;;  %v270_v0 = vlaneseq  ;;  %v845_v24 = vmov 1.0   ;;  %v385_v28 = vld [vmem:[%s1093_s2] sm:$0xff]  ;;  %v388_v29 = vld [vmem:[%s1093_s2 + $0x18] sm:$0xff] }
   0xd   : > { %p250_p6 = scmp.lt.s32.totalorder %s723_s27, 3  ;;  %v386_v31 = vld [vmem:[%s1093_s2 + $0x8] sm:$0xff]  ;;  %v387_v32 = vld [vmem:[%s1093_s2 + $0x10] sm:$0xff]  ;;  %v846_v35 = vmov 0   ;;  %v470_v36 = vld [vmem:[%s1095_s4] sm:$0xff]  ;;  %s727_s25 = sshll.u32 %s886_s22, 5 }
   0xe   : > { %v894_v1 = vshrl.u32 %v270_v0, 7  ;;  %799 = vset.pattern.permute.xlu0 %v846_v35  ;;  %v471_v40 = vld [vmem:[%s1095_s4 + $0x8] sm:$0xff]  ;;  %v468_v51 = vld [vmem:[#allocation2] sm:$0xff]  ;;  %p262_p7 = scmp.lt.s32.totalorder %s727_s25, 63 }
   0xf   : > { %s1098_s27 = smov (!%p250_p6, %s723_s27), 3  ;;  %474 = vperm.xlu0 %799, %v470_v36   ;;  %v469_v53 = vld [vmem:[#allocation2 + $0x8] sm:$0xff] }
  0x10   : > { %s726_s28 = sshll.u32 %s1098_s27, 2  ;;  %v275_v3 = vadd.s32 32, %v894_v1  ;;  %v274_v23 = vadd.s32 24, %v894_v1  ;;  %v273_v25 = vadd.s32 16, %v894_v1  ;;  %v272_v26 = vadd.s32 8, %v894_v1  ;;  %s724_s7 = sshll.u32 %s1098_s27, 3 }
  0x11   : > { %s259_s6 = scalar_lea.vmem %s1092_s1, %s726_s28  ;;  %s253_s10 = scalar_lea.vmem %s1091_s0, %s724_s7 }
  0x12   : > { %v269_v2 = vld [vmem:[%s259_s6] sm:$0xff]  ;;  %v268_v30 = vld [vmem:[%s253_s10 + $0x8] sm:$0xff]  ;;  %s1100_s25 = smov (!%p262_p7, %s727_s25), 63 }
  0x13   : > { %v276_v4 = vperm.slane %v269_v2, 0  ;;  %v290_v5 = vadd.s32 11, %v269_v2  ;;  %v315_v6 = vadd.s32 18, %v269_v2  ;;  %v340_v7 = vadd.s32 31, %v269_v2  ;;  %v267_v27 = vld [vmem:[%s253_s10] sm:$0xff]  ;;  %s728_s26 = sshll.u32 %s1100_s25, 3 }
  0x14   : > { %v277_v8 = vperm.slane %v269_v2, 4  ;;  %s1022_s29 = scalar_lea.vmem %s1096_s5, %s728_s26 }
  0x15   : > { %v901_v9 = vperm.slane %v276_v4, 0  ;;  %v291_v10 = vperm.slane %v290_v5, 1  ;;  %v316_v11 = vperm.slane %v315_v6, 2  ;;  %v341_v12 = vperm.slane %v340_v7, 3 }
  0x16   : > { %v903_v13 = vperm.slane %v277_v8, 0  ;;  %v292_v14 = vperm.slane %v290_v5, 5  ;;  %v317_v15 = vperm.slane %v315_v6, 6  ;;  %v342_v16 = vperm.slane %v340_v7, 7 }
  0x17   : > { %vm288_vm0 = vcmp.eq.s32.totalorder %v901_v9, %v275_v3  ;;  %v906_v17 = vperm.slane %v291_v10, 1  ;;  %v908_v18 = vperm.slane %v316_v11, 2  ;;  %v910_v19 = vperm.slane %v341_v12, 3  ;;  %479 = vperm.xlu0 %799, %v471_v40  }
  0x18   : > { %v912_v20 = vperm.slane %v292_v14, 1  ;;  %v914_v21 = vperm.slane %v317_v15, 2  ;;  %v916_v22 = vperm.slane %v342_v16, 3  ;;  %vm289_vm5 = vcmp.eq.s32.totalorder %v903_v13, %v275_v3 }
  0x19   : > { %vm303_vm1 = vcmp.eq.s32.totalorder %v906_v17, %v275_v3  ;;  %vm328_vm2 = vcmp.eq.s32.totalorder %v908_v18, %v275_v3  ;;  %vm353_vm3 = vcmp.eq.s32.totalorder %v910_v19, %v275_v3  ;;  %vm286_vm12 = vcmp.eq.s32.totalorder %v901_v9, %v274_v23 }
  0x1a   : > { %vm313_vm4 = vmor %vm288_vm0, %vm303_vm1  ;;  %vm304_vm6 = vcmp.eq.s32.totalorder %v912_v20, %v275_v3  ;;  %vm329_vm8 = vcmp.eq.s32.totalorder %v914_v21, %v275_v3  ;;  %vm354_vm10 = vcmp.eq.s32.totalorder %v916_v22, %v275_v3  ;;  %vm301_vm13 = vcmp.eq.s32.totalorder %v906_v17, %v274_v23 }
  0x1b   : > { %vm338_vm7 = vmor %vm313_vm4, %vm328_vm2  ;;  %vm326_vm15 = vcmp.eq.s32.totalorder %v908_v18, %v274_v23  ;;  %vm351_vm1 = vcmp.eq.s32.totalorder %v910_v19, %v274_v23  ;;  %vm302_vm4 = vcmp.eq.s32.totalorder %v912_v20, %v274_v23 }
  0x1c   : > { %vm363_vm9 = vmor %vm338_vm7, %vm353_vm3  ;;  %vm287_vm3 = vcmp.eq.s32.totalorder %v903_v13, %v274_v23 }
  0x1d   : > { %739 = vmatpush.msk.msra.mxu0 %vm363_vm9, %v845_v24  ;;  %vm314_vm11 = vmor %vm289_vm5, %vm304_vm6  ;;  %763 = vmatpush.msk.msra.mxu2 %vm363_vm9, %v845_v24  ;;  %vm327_vm6 = vcmp.eq.s32.totalorder %v914_v21, %v274_v23 }
  0x1e   : > { %vm339_vm14 = vmor %vm314_vm11, %vm329_vm8  ;;  %vm352_vm8 = vcmp.eq.s32.totalorder %v916_v22, %v274_v23  ;;  %vm299_vm11 = vcmp.eq.s32.totalorder %v906_v17, %v273_v25 }
  0x1f   : > { %vm364_vm0 = vmor %vm339_vm14, %vm354_vm10  ;;  %vm284_vm10 = vcmp.eq.s32.totalorder %v901_v9, %v273_v25 }
  0x20   : > { %748 = vmatpush.msk.msra.mxu1 %vm364_vm0, %v845_v24  ;;  %vm311_vm2 = vmor %vm286_vm12, %vm301_vm13  ;;  %769 = vmatpush.msk.msra.mxu3 %vm364_vm0, %v845_v24  ;;  %vm324_vm13 = vcmp.eq.s32.totalorder %v908_v18, %v273_v25 }
  0x21   : > { %vm336_vm5 = vmor %vm311_vm2, %vm326_vm15  ;;  %vm349_vm15 = vcmp.eq.s32.totalorder %v910_v19, %v273_v25  ;;  %vm300_vm2 = vcmp.eq.s32.totalorder %v912_v20, %v273_v25 }
  0x22   : > { %vm361_vm7 = vmor %vm336_vm5, %vm351_vm1  ;;  %vm285_vm1 = vcmp.eq.s32.totalorder %v903_v13, %v273_v25 }
  0x23   : > { %740 = vmatpush.msk.msra.mxu0 %vm361_vm7, %v845_v24  ;;  %vm312_vm9 = vmor %vm287_vm3, %vm302_vm4  ;;  %764 = vmatpush.msk.msra.mxu2 %vm361_vm7, %v845_v24  ;;  %vm325_vm4 = vcmp.eq.s32.totalorder %v914_v21, %v273_v25 }
  0x24   : > { %vm337_vm12 = vmor %vm312_vm9, %vm327_vm6  ;;  %vm350_vm6 = vcmp.eq.s32.totalorder %v916_v22, %v273_v25  ;;  %vm297_vm9 = vcmp.eq.s32.totalorder %v906_v17, %v272_v26 }
  0x25   : > { %vm362_vm14 = vmor %vm337_vm12, %vm352_vm8  ;;  %vm282_vm8 = vcmp.eq.s32.totalorder %v901_v9, %v272_v26 }
  0x26   : > { %749 = vmatpush.msk.msra.mxu1 %vm362_vm14, %v845_v24  ;;  %vm309_vm0 = vmor %vm284_vm10, %vm299_vm11  ;;  %770 = vmatpush.msk.msra.mxu3 %vm362_vm14, %v845_v24  ;;  %vm322_vm11 = vcmp.eq.s32.totalorder %v908_v18, %v272_v26 }
  0x27   : > { %vm334_vm3 = vmor %vm309_vm0, %vm324_vm13  ;;  %vm347_vm13 = vcmp.eq.s32.totalorder %v910_v19, %v272_v26  ;;  %vm298_vm0 = vcmp.eq.s32.totalorder %v912_v20, %v272_v26 }
  0x28   : > { %vm359_vm5 = vmor %vm334_vm3, %vm349_vm15  ;;  %vm283_vm15 = vcmp.eq.s32.totalorder %v903_v13, %v272_v26 }
  0x29   : > { %741 = vmatpush.msk.msra.mxu0 %vm359_vm5, %v845_v24  ;;  %vm310_vm7 = vmor %vm285_vm1, %vm300_vm2  ;;  %765 = vmatpush.msk.msra.mxu2 %vm359_vm5, %v845_v24  ;;  %vm323_vm2 = vcmp.eq.s32.totalorder %v914_v21, %v272_v26 }
  0x2a   : > { %vm335_vm10 = vmor %vm310_vm7, %vm325_vm4  ;;  %vm348_vm4 = vcmp.eq.s32.totalorder %v916_v22, %v272_v26  ;;  %vm295_vm7 = vcmp.eq.s32.totalorder %v906_v17, %v894_v1 }
  0x2b   : > { %vm360_vm12 = vmor %vm335_vm10, %vm350_vm6  ;;  %vm280_vm6 = vcmp.eq.s32.totalorder %v901_v9, %v894_v1 }
  0x2c   : > { %750 = vmatpush.msk.msra.mxu1 %vm360_vm12, %v845_v24  ;;  %vm307_vm14 = vmor %vm282_vm8, %vm297_vm9  ;;  %771 = vmatpush.msk.msra.mxu3 %vm360_vm12, %v845_v24  ;;  %vm320_vm9 = vcmp.eq.s32.totalorder %v908_v18, %v894_v1 }
  0x2d   : > { %vm332_vm1 = vmor %vm307_vm14, %vm322_vm11  ;;  %vm345_vm11 = vcmp.eq.s32.totalorder %v910_v19, %v894_v1  ;;  %vm296_vm14 = vcmp.eq.s32.totalorder %v912_v20, %v894_v1 }
  0x2e   : > { %vm357_vm3 = vmor %vm332_vm1, %vm347_vm13  ;;  %vm281_vm13 = vcmp.eq.s32.totalorder %v903_v13, %v894_v1 }
  0x2f   : > { %742 = vmatpush.msk.msra.mxu0 %vm357_vm3, %v845_v24  ;;  %vm308_vm5 = vmor %vm283_vm15, %vm298_vm0  ;;  %766 = vmatpush.msk.msra.mxu2 %vm357_vm3, %v845_v24  ;;  %vm321_vm0 = vcmp.eq.s32.totalorder %v914_v21, %v894_v1 }
  0x30   : > { %vm333_vm8 = vmor %vm308_vm5, %vm323_vm2  ;;  %vm346_vm2 = vcmp.eq.s32.totalorder %v916_v22, %v894_v1 }
  0x31   : > { %vm358_vm10 = vmor %vm333_vm8, %vm348_vm4  ;;  %vm389_vm4 = vcmask 392192   ;;  %vm603_vm8 = vcmask 130048  }
  0x32   : > { %751 = vmatpush.msk.msra.mxu1 %vm358_vm10, %v845_v24  ;;  %vm305_vm12 = vmor %vm280_vm6, %vm295_vm7  ;;  %772 = vmatpush.msk.msra.mxu3 %vm358_vm10, %v845_v24  ;;  %vm482_vm7 = vcmask 261120  }
  0x33   : > { %vm330_vm15 = vmor %vm305_vm12, %vm320_vm9 }
  0x34   : > { %vm355_vm1 = vmor %vm330_vm15, %vm345_vm11 }
  0x35   : > { %743 = vmatpush.msk.msra.mxu0 %vm355_vm1, %v845_v24  ;;  %vm306_vm3 = vmor %vm281_vm13, %vm296_vm14  ;;  %767 = vmatpush.msk.msra.mxu2 %vm355_vm1, %v845_v24 }
  0x36   : > { %vm331_vm5 = vmor %vm306_vm3, %vm321_vm0 }
  0x37   : > { %vm356_vm6 = vmor %vm331_vm5, %vm346_vm2  ;;  %417 = vmatpush.msra.mxu0 %v267_v27  ;;  %768 = vmatpush.msra.mxu2 %v267_v27 }
  0x38   : > { %752 = vmatpush.msk.msra.mxu1 %vm356_vm6, %v845_v24  ;;  %744 = vmatmul.msk.f32.vlgmr.msra.gmra.mxu0 %vm389_vm4, %v385_v28 }
  0x39   : > { %773 = vmatpush.msk.msra.mxu3 %vm356_vm6, %v845_v24  ;;  %747 = vmatmul.msk.f32.vlgmr.msra.gmra.mxu2 %vm389_vm4, %v388_v29 }
  0x3a   : > { %446 = vmatpush.msra.mxu1 %v268_v30 }
  0x3b   : > { %753 = vmatmul.msk.f32.vlgmr.msra.gmra.mxu1 %vm389_vm4, %v385_v28  ;;  %774 = vmatpush.msra.mxu3 %v268_v30 }
  0x3c   : > { %756 = vmatmul.msk.f32.vlgmr.msra.gmra.mxu3 %vm389_vm4, %v388_v29 }
  0x40   : > { %745 = vmatmul.msk.f32.gmra.mxu0 %vm389_vm4, %v386_v31 }
  0x43   : > { %754 = vmatmul.msk.f32.gmra.mxu1 %vm389_vm4, %v386_v31 }
  0x48   : > { %746 = vmatmul.msk.f32.gmra.mxu0 %vm389_vm4, %v387_v32 }
  0x4b   : > { %755 = vmatmul.msk.f32.gmra.mxu1 %vm389_vm4, %v387_v32 }
  0x81   : > { %v475_v54 = vpop.permute.xlu0 %474 }
  0x89   : > { %v480_v61 = vpop.permute.xlu0 %479 }
  0xb5   : > { %v419_v33 = vpop.f32.mrf.mxu0 }
  0xb6   : > { %v460_v50 = vmax.f32 %v419_v33, 0.0 }
  0xb8   : > { %v448_v34 = vpop.f32.mrf.mxu1 }
  0xb9   : > { %v461_v52 = vmax.f32 %v448_v34, 0.0 }
  0xbc   : > { %v428_v37 = vpop.f32.mrf.mxu2 }
  0xbd   : > { %v422_v38 = vpop.f32.mrf.mxu0  ;;  %v466_v39 = vmax.f32 %v428_v37, 0.0 }
  0xbe   : > { %v462_v46 = vmax.f32 %v422_v38, 0.0 }
  0xbf   : > { %v457_v41 = vpop.f32.mrf.mxu3  ;;  %501 = vmatpush.msrb.mxu2 %v466_v39 }
  0xc0   : > { %v451_v42 = vpop.f32.mrf.mxu1  ;;  %v467_v43 = vmax.f32 %v457_v41, 0.0 }
  0xc1   : > { %v463_v48 = vmax.f32 %v451_v42, 0.0 }
  0xc2   : > { %524 = vmatpush.msrb.mxu3 %v467_v43 }
  0xc5   : > { %v425_v44 = vpop.f32.mrf.mxu0 }
  0xc6   : > { %v464_v45 = vmax.f32 %v425_v44, 0.0 }
  0xc8   : > { %v454_v47 = vpop.f32.mrf.mxu1  ;;  %502 = vmatpush.msrb.mxu2 %v464_v45 }
  0xc9   : > { %v465_v49 = vmax.f32 %v454_v47, 0.0 }
  0xca   : > { %503 = vmatpush.msrb.mxu2 %v462_v46 }
  0xcb   : > { %525 = vmatpush.msrb.mxu3 %v465_v49 }
  0xcc   : > { %504 = vmatpush.msrb.mxu2 %v460_v50 }
  0xcd   : > { %526 = vmatpush.msrb.mxu3 %v463_v48  ;;  %757 = vmatmul.msk.f32.vlgmr.msrb.gmra.mxu2 %vm482_vm7, %v468_v51 }
  0xcf   : > { %527 = vmatpush.msrb.mxu3 %v461_v52 }
  0xd0   : > { %759 = vmatmul.msk.f32.vlgmr.msrb.gmra.mxu3 %vm482_vm7, %v468_v51 }
  0xd5   : > { %758 = vmatmul.msk.f32.gmra.mxu2 %vm482_vm7, %v469_v53 }
  0xd8   : > { %760 = vmatmul.msk.f32.gmra.mxu3 %vm482_vm7, %v469_v53 }
 0x150   : > { %v506_v55 = vpop.f32.mrf.mxu2 }
 0x151   : > { %v507_v56 = vadd.f32 %v506_v55, %v475_v54 }
 0x153   : > { %v529_v57 = vpop.f32.mrf.mxu3  ;;  %v535_v58 = vmax.f32 %v507_v56, 0.0 }
 0x154   : > { %v530_v59 = vadd.f32 %v529_v57, %v475_v54 }
 0x155   : > { %539 = vxpose.xlu1.b32.start [1/2] (short) %v535_v58, 128 }
 0x156   : > { %v536_v60 = vmax.f32 %v530_v59, 0.0 }
 0x158   : > { %571 = vxpose.xlu2.b32.start [1/2] (short) %v536_v60, 128  ;;  %v509_v62 = vpop.f32.mrf.mxu2 }
 0x159   : > { %v510_v63 = vadd.f32 %v509_v62, %v480_v61 }
 0x15b   : > { %v537_v0 = vmax.f32 %v510_v63, 0.0  ;;  %v532_v1 = vpop.f32.mrf.mxu3 }
 0x15c   : > { %v533_v2 = vadd.f32 %v532_v1, %v480_v61 }
 0x15d   : > { %540 = vxpose.xlu1.b32.end [2/2] (short) %v537_v0, 128 }
 0x15e   : > { %v538_v3 = vmax.f32 %v533_v2, 0.0 }
 0x160   : > { %572 = vxpose.xlu2.b32.end [2/2] (short) %v538_v3, 128 }
 0x1f1   : > { %v587_v4 = vpop.trf.xlu2 }
 0x1f2   : > { %620 = vst.msk [vmem:[%s1022_s29 + $0x80] sm:$0xff] %vm603_vm8, %v587_v4 }
 0x1f9   : > { %v555_v5 = vpop.trf.xlu1  ;;  %v588_v6 = vpop.trf.xlu2 }
 0x1fa   : > { %604 = vst.msk [vmem:[%s1022_s29] sm:$0xff] %vm603_vm8, %v555_v5 }
 0x1fb   : > { %621 = vst.msk [vmem:[%s1022_s29 + $0x88] sm:$0xff] %vm603_vm8, %v588_v6 }
 0x201   : > { %v556_v7 = vpop.trf.xlu1  ;;  %v589_v8 = vpop.trf.xlu2 }
 0x202   : > { %605 = vst.msk [vmem:[%s1022_s29 + $0x8] sm:$0xff] %vm603_vm8, %v556_v7 }
 0x203   : > { %622 = vst.msk [vmem:[%s1022_s29 + $0x90] sm:$0xff] %vm603_vm8, %v589_v8 }
 0x209   : > { %v557_v9 = vpop.trf.xlu1  ;;  %v590_v10 = vpop.trf.xlu2 }
 0x20a   : > { %606 = vst.msk [vmem:[%s1022_s29 + $0x10] sm:$0xff] %vm603_vm8, %v557_v9 }
 0x20b   : > { %623 = vst.msk [vmem:[%s1022_s29 + $0x98] sm:$0xff] %vm603_vm8, %v590_v10 }
 0x211   : > { %v558_v11 = vpop.trf.xlu1  ;;  %v591_v12 = vpop.trf.xlu2 }
 0x212   : > { %607 = vst.msk [vmem:[%s1022_s29 + $0x18] sm:$0xff] %vm603_vm8, %v558_v11 }
 0x213   : > { %624 = vst.msk [vmem:[%s1022_s29 + $0xa0] sm:$0xff] %vm603_vm8, %v591_v12 }
 0x219   : > { %v559_v13 = vpop.trf.xlu1  ;;  %v592_v14 = vpop.trf.xlu2 }
 0x21a   : > { %608 = vst.msk [vmem:[%s1022_s29 + $0x20] sm:$0xff] %vm603_vm8, %v559_v13 }
 0x21b   : > { %625 = vst.msk [vmem:[%s1022_s29 + $0xa8] sm:$0xff] %vm603_vm8, %v592_v14 }
 0x221   : > { %v560_v15 = vpop.trf.xlu1  ;;  %v593_v16 = vpop.trf.xlu2 }
 0x222   : > { %609 = vst.msk [vmem:[%s1022_s29 + $0x28] sm:$0xff] %vm603_vm8, %v560_v15 }
 0x223   : > { %626 = vst.msk [vmem:[%s1022_s29 + $0xb0] sm:$0xff] %vm603_vm8, %v593_v16 }
 0x229   : > { %v561_v17 = vpop.trf.xlu1  ;;  %v594_v18 = vpop.trf.xlu2 }
 0x22a   : > { %610 = vst.msk [vmem:[%s1022_s29 + $0x30] sm:$0xff] %vm603_vm8, %v561_v17 }
 0x22b   : > { %627 = vst.msk [vmem:[%s1022_s29 + $0xb8] sm:$0xff] %vm603_vm8, %v594_v18 }
 0x231   : > { %v562_v19 = vpop.trf.xlu1  ;;  %v595_v20 = vpop.trf.xlu2 }
 0x232   : > { %611 = vst.msk [vmem:[%s1022_s29 + $0x38] sm:$0xff] %vm603_vm8, %v562_v19 }
 0x233   : > { %628 = vst.msk [vmem:[%s1022_s29 + $0xc0] sm:$0xff] %vm603_vm8, %v595_v20 }
 0x239   : > { %v563_v21 = vpop.trf.xlu1  ;;  %v596_v22 = vpop.trf.xlu2 }
 0x23a   : > { %612 = vst.msk [vmem:[%s1022_s29 + $0x40] sm:$0xff] %vm603_vm8, %v563_v21 }
 0x23b   : > { %629 = vst.msk [vmem:[%s1022_s29 + $0xc8] sm:$0xff] %vm603_vm8, %v596_v22 }
 0x241   : > { %v564_v23 = vpop.trf.xlu1  ;;  %v597_v24 = vpop.trf.xlu2 }
 0x242   : > { %613 = vst.msk [vmem:[%s1022_s29 + $0x48] sm:$0xff] %vm603_vm8, %v564_v23 }
 0x243   : > { %630 = vst.msk [vmem:[%s1022_s29 + $0xd0] sm:$0xff] %vm603_vm8, %v597_v24 }
 0x249   : > { %v565_v25 = vpop.trf.xlu1  ;;  %v598_v26 = vpop.trf.xlu2 }
 0x24a   : > { %614 = vst.msk [vmem:[%s1022_s29 + $0x50] sm:$0xff] %vm603_vm8, %v565_v25 }
 0x24b   : > { %631 = vst.msk [vmem:[%s1022_s29 + $0xd8] sm:$0xff] %vm603_vm8, %v598_v26 }
 0x251   : > { %v566_v27 = vpop.trf.xlu1  ;;  %v599_v28 = vpop.trf.xlu2 }
 0x252   : > { %615 = vst.msk [vmem:[%s1022_s29 + $0x58] sm:$0xff] %vm603_vm8, %v566_v27 }
 0x253   : > { %632 = vst.msk [vmem:[%s1022_s29 + $0xe0] sm:$0xff] %vm603_vm8, %v599_v28 }
 0x259   : > { %v567_v29 = vpop.trf.xlu1  ;;  %v600_v30 = vpop.trf.xlu2 }
 0x25a   : > { %616 = vst.msk [vmem:[%s1022_s29 + $0x60] sm:$0xff] %vm603_vm8, %v567_v29 }
 0x25b   : > { %633 = vst.msk [vmem:[%s1022_s29 + $0xe8] sm:$0xff] %vm603_vm8, %v600_v30 }
 0x261   : > { %v568_v31 = vpop.trf.xlu1  ;;  %v601_v32 = vpop.trf.xlu2 }
 0x262   : > { %617 = vst.msk [vmem:[%s1022_s29 + $0x68] sm:$0xff] %vm603_vm8, %v568_v31 }
 0x263   : > { %634 = vst.msk [vmem:[%s1022_s29 + $0xf0] sm:$0xff] %vm603_vm8, %v601_v32 }
 0x269   : > { %v569_v33 = vpop.trf.xlu1  ;;  %v602_v34 = vpop.trf.xlu2 }
 0x26a   : > { %618 = vst.msk [vmem:[%s1022_s29 + $0x70] sm:$0xff] %vm603_vm8, %v569_v33 }
 0x26b   : > { %635 = vst.msk [vmem:[%s1022_s29 + $0xf8] sm:$0xff] %vm603_vm8, %v602_v34 }
 0x271   : > { %v570_v35 = vpop.trf.xlu1 }
 0x272   : > { %619 = vst.msk [vmem:[%s1022_s29 + $0x78] sm:$0xff] %vm603_vm8, %v570_v35 }
 0x273 PF: > { %s16_s18 = sadd.s32 1, %s840_s18  }
 0x274   : > { %p13_p8 = scmp.ge.s32.totalorder %s16_s18, 4  }
 0x276   :  { %15 = sbr.rel (!%p13_p8) target bundleno = 1 (0x1), region = 78 }
 0x27b   :  { %658 = vsyncpa [#allocation3], 1 }
 0x27c   :  { %660 = vsyncpa [#allocation3 + $0x1], 1 }

</bundles_post_ra>
